<compile_context>
chip_gen: v6e
topology: v6e:2x2x1
jax: 0.10.0
libtpu: 0.0.40
codegen_flags: <defaults>
</compile_context>

<pallas_src>
import functools

import jax
import jax.numpy as jnp
from jax.experimental import pallas as pl
from jax.experimental.pallas import tpu as pltpu


def _round_up(x: int, m: int) -> int:
    return (x + m - 1) // m * m


def _gating_kernel(gen_idx_ref, hidden_hbm, w_ref, out_ref, row_buf, sem, *,
                   n_experts: int, batch_size: int, seq_len: int,
                   chunk_b: int):
    """One grid step == one batch chunk of <= chunk_b rows.

    gen_idx_ref : SMEM (B,) int32   -- last-valid-token index per batch row
    hidden_hbm  : HBM  (B*S, H)     -- raw backbone hidden states (pl.ANY)
    w_ref       : VMEM (H, E_pad)   -- gating weight, whole-array resident
    out_ref     : VMEM (chunk_b, E_pad) -- this chunk's softmax output block
    row_buf     : VMEM (chunk_b, H) -- staging buffer the row DMAs land in
    sem         : DMA semaphores (chunk_b,)
    """
    c = pl.program_id(0)
    base = c * chunk_b

    # Issue ALL row-gather DMAs for this chunk before waiting on any of them:
    # many small copies in flight hide HBM latency. Row/token indices are
    # data-dependent scalars read from SMEM; rows past the real batch are
    # clamped to the last row (their output is sliced off in the wrapper).
    copies = []
    for i in range(chunk_b):
        row = jnp.minimum(base + i, batch_size - 1)
        tok = gen_idx_ref[row]
        cp = pltpu.make_async_copy(
            hidden_hbm.at[row * seq_len + tok],   # (H,) row in HBM
            row_buf.at[i],                        # (H,) row in VMEM scratch
            sem.at[i],
        )
        cp.start()
        copies.append(cp)
    for cp in copies:
        cp.wait()

    # One batched MXU matmul with f32 accumulation for the whole chunk.
    logits = jnp.dot(row_buf[...], w_ref[...],
                     preferred_element_type=jnp.float32)

    # Mask padded expert lanes so they contribute nothing to the softmax.
    lane = jax.lax.broadcasted_iota(jnp.int32, logits.shape, dimension=1)
    logits = jnp.where(lane < n_experts, logits, -jnp.inf)

    # Numerically stable softmax over the expert axis (exact divide: the
    # kernel is DMA/overhead bound, so this costs nothing measurable).
    m = jnp.max(logits, axis=-1, keepdims=True)
    e = jnp.exp(logits - m)
    probs = e / jnp.sum(e, axis=-1, keepdims=True)
    out_ref[...] = probs.astype(out_ref.dtype)


def llama_gating_forward(hidden_states, attention_mask, w_gate_t):
    """Pallas implementation of LlamaGating.forward (given backbone features).

    hidden_states : (B, S, H) float -- last hidden states from the backbone
    attention_mask: (B, S) int or None -- 1 for valid tokens, 0 for padding
    w_gate_t      : (H, E)    float -- nn.Linear(H, E, bias=False).weight.T
    returns       : (B, E)    f32   -- softmax gate scores per batch element
    """
    B, S, H = hidden_states.shape
    H_w, E = w_gate_t.shape
    assert H_w == H, "w_gate_t must be (H, E)"

    # gen_idx = attention_mask.sum(dim=1) - 1; an all-padding row gives -1,
    # which in PyTorch indexes the LAST token -> use mod S to match exactly.
    if attention_mask is None:
        gen_idx = jnp.full((B,), S - 1, dtype=jnp.int32)
    else:
        gen_idx = jnp.sum(attention_mask.astype(jnp.int32), axis=1) - 1
        gen_idx = jnp.mod(gen_idx, S).astype(jnp.int32)

    # Lane-dense expert axis; sublane-dense batch chunks of at most 128 rows.
    E_pad = max(_round_up(E, 128), 128)
    CHUNK_B = min(max(_round_up(B, 8), 8), 128)
    num_chunks = -(-B // CHUNK_B)
    B_out = num_chunks * CHUNK_B

    w_pad = w_gate_t
    if E_pad != E:
        w_pad = jnp.pad(w_gate_t, ((0, 0), (0, E_pad - E)))

    # Flatten (B, S, H) -> (B*S, H) so the gather is a single dynamic row
    # index into the raw HBM ref (simplest, robust manual-DMA pattern).
    hidden_flat = hidden_states.reshape(B * S, H)

    kernel = functools.partial(
        _gating_kernel,
        n_experts=E, batch_size=B, seq_len=S, chunk_b=CHUNK_B,
    )

    out = pl.pallas_call(
        kernel,
        out_shape=jax.ShapeDtypeStruct((B_out, E_pad), jnp.float32),
        grid=(num_chunks,),
        in_specs=[
            # gen_idx: tiny int32 vector, lives in SMEM for scalar indexing.
            pl.BlockSpec(memory_space=pltpu.MemorySpace.SMEM),
            # hidden states: stay in HBM, rows are gathered by manual DMA.
            pl.BlockSpec(memory_space=pl.ANY),
            # gating weight: whole array resident in VMEM, single buffer.
            pl.BlockSpec(memory_space=pltpu.MemorySpace.VMEM),
        ],
        # Each chunk writes its own lane-dense output block -> "parallel".
        out_specs=pl.BlockSpec((CHUNK_B, E_pad), lambda c: (c, 0)),
        scratch_shapes=[
            pltpu.VMEM((CHUNK_B, H), hidden_states.dtype),
            pltpu.SemaphoreType.DMA((CHUNK_B,)),
        ],
        compiler_params=pltpu.CompilerParams(
            dimension_semantics=("parallel",),
        ),
    )(gen_idx, hidden_flat, w_pad)

    return out[:B, :E]


if __name__ == "__main__":
    # Small shapes consistent with the module: batch=2, seq=8, hidden=32, experts=4
    B, S, H, E = 2, 8, 32, 4

    key = jax.random.PRNGKey(0)
    k_hid, k_w = jax.random.split(key)

    # Stand-in for llama(...).hidden_states[-1]
    hidden_states = jax.random.normal(k_hid, (B, S, H), dtype=jnp.float32)

    # nn.Linear(H, E, bias=False) default init: U(-1/sqrt(H), 1/sqrt(H)); weight (E, H)
    bound = 1.0 / jnp.sqrt(jnp.float32(H))
    w_gate = jax.random.uniform(k_w, (E, H), minval=-bound, maxval=bound,
                                dtype=jnp.float32)
    w_gate_t = w_gate.T  # (H, E)

    # Ragged attention mask: lengths 8 and 5
    lengths = jnp.array([8, 5], dtype=jnp.int32)
    attention_mask = (jnp.arange(S)[None, :] < lengths[:, None]).astype(jnp.int32)

    gate_scores = llama_gating_forward(hidden_states, attention_mask, w_gate_t)
    gate_scores = jax.block_until_ready(gate_scores)

    # Pure-JAX reference for sanity
    logits_ref = jnp.einsum("bsh,he->bse", hidden_states, w_gate_t)
    gen_idx = jnp.mod(jnp.sum(attention_mask, axis=1) - 1, S)
    pooled = logits_ref[jnp.arange(B), gen_idx]
    ref = jax.nn.softmax(pooled, axis=-1)

    assert gate_scores.shape == (B, E)
    assert jnp.allclose(gate_scores, ref, atol=2e-3, rtol=2e-3), (
        f"mismatch:\n{gate_scores}\nvs\n{ref}"
    )

    print("KERNEL_OK")
</pallas_src>

<mosaic_0001>
module attributes {stable_mosaic.version = 11 : i64} {
  func.func @_gating_kernel(%arg0: i32, %arg1: memref<2xi32, #tpu.memory_space<smem>>, %arg2: memref<16x32xf32, #tpu.memory_space<any>>, %arg3: memref<32x128xf32, #tpu.memory_space<vmem>>, %arg4: memref<8x128xf32, #tpu.memory_space<vmem>>, %arg5: memref<8x32xf32, #tpu.memory_space<vmem>>, %arg6: memref<8x!tpu.dma_semaphore, #tpu.memory_space<semaphore_mem>>) attributes {dimension_semantics = [#tpu.dimension_semantics<parallel>], iteration_bounds = array<i64: 1>, scalar_prefetch = 0 : i64, scratch_operands = 2 : i64, tpu.core_type = #tpu.core_type<tc>, window_params = [{transform_indices = @transform_0, window_bounds = array<i64: 2>}, {}, {pipeline_mode = #tpu.pipeline_mode<synchronous>, transform_indices = @transform_2, window_bounds = array<i64: 32, 128>}, {transform_indices = @transform_3, window_bounds = array<i64: 8, 128>}]} {
    %c8_i32 = arith.constant 8 : i32
    %0 = arith.muli %arg0, %c8_i32 : i32
    %c0_i32 = arith.constant 0 : i32
    %1 = arith.addi %0, %c0_i32 : i32
    %c1_i32 = arith.constant 1 : i32
    %2 = arith.minsi %1, %c1_i32 : i32
    %3 = arith.index_cast %2 : i32 to index
    %4 = memref.load %arg1[%3] : memref<2xi32, #tpu.memory_space<smem>>
    %c8_i32_0 = arith.constant 8 : i32
    %5 = arith.muli %2, %c8_i32_0 : i32
    %6 = arith.addi %5, %4 : i32
    %c0_i32_1 = arith.constant 0 : i32
    %c0_i32_2 = arith.constant 0 : i32
    %c0_i32_3 = arith.constant 0 : i32
    %7 = tpu.memref_slice %arg2[%6, %c0_i32_3] : memref<16x32xf32, #tpu.memory_space<any>> -> memref<1x32xf32, #tpu.memory_space<any>>
    %8 = tpu.memref_squeeze %7 : memref<1x32xf32, #tpu.memory_space<any>> -> memref<32xf32, #tpu.memory_space<any>>
    %c0_i32_4 = arith.constant 0 : i32
    %9 = tpu.memref_slice %arg5[%c0_i32_1, %c0_i32_4] : memref<8x32xf32, #tpu.memory_space<vmem>> -> memref<1x32xf32, #tpu.memory_space<vmem>>
    %10 = tpu.memref_squeeze %9 : memref<1x32xf32, #tpu.memory_space<vmem>> -> memref<32xf32, #tpu.memory_space<vmem>>
    %11 = tpu.memref_slice %arg6[%c0_i32_2] : memref<8x!tpu.dma_semaphore, #tpu.memory_space<semaphore_mem>> -> memref<1x!tpu.dma_semaphore, #tpu.memory_space<semaphore_mem>>
    %12 = tpu.memref_squeeze %11 : memref<1x!tpu.dma_semaphore, #tpu.memory_space<semaphore_mem>> -> memref<!tpu.dma_semaphore, #tpu.memory_space<semaphore_mem>>
    tpu.enqueue_dma source(%8 : memref<32xf32, #tpu.memory_space<any>>) target(%10 : memref<32xf32, #tpu.memory_space<vmem>>) target_semaphore(%12 : memref<!tpu.dma_semaphore, #tpu.memory_space<semaphore_mem>>)
    %c1_i32_5 = arith.constant 1 : i32
    %13 = arith.addi %0, %c1_i32_5 : i32
    %c1_i32_6 = arith.constant 1 : i32
    %14 = arith.minsi %13, %c1_i32_6 : i32
    %15 = arith.index_cast %14 : i32 to index
    %16 = memref.load %arg1[%15] : memref<2xi32, #tpu.memory_space<smem>>
    %c8_i32_7 = arith.constant 8 : i32
    %17 = arith.muli %14, %c8_i32_7 : i32
    %18 = arith.addi %17, %16 : i32
    %c1_i32_8 = arith.constant 1 : i32
    %c1_i32_9 = arith.constant 1 : i32
    %c0_i32_10 = arith.constant 0 : i32
    %19 = tpu.memref_slice %arg2[%18, %c0_i32_10] : memref<16x32xf32, #tpu.memory_space<any>> -> memref<1x32xf32, #tpu.memory_space<any>>
    %20 = tpu.memref_squeeze %19 : memref<1x32xf32, #tpu.memory_space<any>> -> memref<32xf32, #tpu.memory_space<any>>
    %c0_i32_11 = arith.constant 0 : i32
    %21 = tpu.memref_slice %arg5[%c1_i32_8, %c0_i32_11] : memref<8x32xf32, #tpu.memory_space<vmem>> -> memref<1x32xf32, #tpu.memory_space<vmem>>
    %22 = tpu.memref_squeeze %21 : memref<1x32xf32, #tpu.memory_space<vmem>> -> memref<32xf32, #tpu.memory_space<vmem>>
    %23 = tpu.memref_slice %arg6[%c1_i32_9] : memref<8x!tpu.dma_semaphore, #tpu.memory_space<semaphore_mem>> -> memref<1x!tpu.dma_semaphore, #tpu.memory_space<semaphore_mem>>
    %24 = tpu.memref_squeeze %23 : memref<1x!tpu.dma_semaphore, #tpu.memory_space<semaphore_mem>> -> memref<!tpu.dma_semaphore, #tpu.memory_space<semaphore_mem>>
    tpu.enqueue_dma source(%20 : memref<32xf32, #tpu.memory_space<any>>) target(%22 : memref<32xf32, #tpu.memory_space<vmem>>) target_semaphore(%24 : memref<!tpu.dma_semaphore, #tpu.memory_space<semaphore_mem>>)
    %c2_i32 = arith.constant 2 : i32
    %25 = arith.addi %0, %c2_i32 : i32
    %c1_i32_12 = arith.constant 1 : i32
    %26 = arith.minsi %25, %c1_i32_12 : i32
    %27 = arith.index_cast %26 : i32 to index
    %28 = memref.load %arg1[%27] : memref<2xi32, #tpu.memory_space<smem>>
    %c8_i32_13 = arith.constant 8 : i32
    %29 = arith.muli %26, %c8_i32_13 : i32
    %30 = arith.addi %29, %28 : i32
    %c2_i32_14 = arith.constant 2 : i32
    %c2_i32_15 = arith.constant 2 : i32
    %c0_i32_16 = arith.constant 0 : i32
    %31 = tpu.memref_slice %arg2[%30, %c0_i32_16] : memref<16x32xf32, #tpu.memory_space<any>> -> memref<1x32xf32, #tpu.memory_space<any>>
    %32 = tpu.memref_squeeze %31 : memref<1x32xf32, #tpu.memory_space<any>> -> memref<32xf32, #tpu.memory_space<any>>
    %c0_i32_17 = arith.constant 0 : i32
    %33 = tpu.memref_slice %arg5[%c2_i32_14, %c0_i32_17] : memref<8x32xf32, #tpu.memory_space<vmem>> -> memref<1x32xf32, #tpu.memory_space<vmem>>
    %34 = tpu.memref_squeeze %33 : memref<1x32xf32, #tpu.memory_space<vmem>> -> memref<32xf32, #tpu.memory_space<vmem>>
    %35 = tpu.memref_slice %arg6[%c2_i32_15] : memref<8x!tpu.dma_semaphore, #tpu.memory_space<semaphore_mem>> -> memref<1x!tpu.dma_semaphore, #tpu.memory_space<semaphore_mem>>
    %36 = tpu.memref_squeeze %35 : memref<1x!tpu.dma_semaphore, #tpu.memory_space<semaphore_mem>> -> memref<!tpu.dma_semaphore, #tpu.memory_space<semaphore_mem>>
    tpu.enqueue_dma source(%32 : memref<32xf32, #tpu.memory_space<any>>) target(%34 : memref<32xf32, #tpu.memory_space<vmem>>) target_semaphore(%36 : memref<!tpu.dma_semaphore, #tpu.memory_space<semaphore_mem>>)
    %c3_i32 = arith.constant 3 : i32
    %37 = arith.addi %0, %c3_i32 : i32
    %c1_i32_18 = arith.constant 1 : i32
    %38 = arith.minsi %37, %c1_i32_18 : i32
    %39 = arith.index_cast %38 : i32 to index
    %40 = memref.load %arg1[%39] : memref<2xi32, #tpu.memory_space<smem>>
    %c8_i32_19 = arith.constant 8 : i32
    %41 = arith.muli %38, %c8_i32_19 : i32
    %42 = arith.addi %41, %40 : i32
    %c3_i32_20 = arith.constant 3 : i32
    %c3_i32_21 = arith.constant 3 : i32
    %c0_i32_22 = arith.constant 0 : i32
    %43 = tpu.memref_slice %arg2[%42, %c0_i32_22] : memref<16x32xf32, #tpu.memory_space<any>> -> memref<1x32xf32, #tpu.memory_space<any>>
    %44 = tpu.memref_squeeze %43 : memref<1x32xf32, #tpu.memory_space<any>> -> memref<32xf32, #tpu.memory_space<any>>
    %c0_i32_23 = arith.constant 0 : i32
    %45 = tpu.memref_slice %arg5[%c3_i32_20, %c0_i32_23] : memref<8x32xf32, #tpu.memory_space<vmem>> -> memref<1x32xf32, #tpu.memory_space<vmem>>
    %46 = tpu.memref_squeeze %45 : memref<1x32xf32, #tpu.memory_space<vmem>> -> memref<32xf32, #tpu.memory_space<vmem>>
    %47 = tpu.memref_slice %arg6[%c3_i32_21] : memref<8x!tpu.dma_semaphore, #tpu.memory_space<semaphore_mem>> -> memref<1x!tpu.dma_semaphore, #tpu.memory_space<semaphore_mem>>
    %48 = tpu.memref_squeeze %47 : memref<1x!tpu.dma_semaphore, #tpu.memory_space<semaphore_mem>> -> memref<!tpu.dma_semaphore, #tpu.memory_space<semaphore_mem>>
    tpu.enqueue_dma source(%44 : memref<32xf32, #tpu.memory_space<any>>) target(%46 : memref<32xf32, #tpu.memory_space<vmem>>) target_semaphore(%48 : memref<!tpu.dma_semaphore, #tpu.memory_space<semaphore_mem>>)
    %c4_i32 = arith.constant 4 : i32
    %49 = arith.addi %0, %c4_i32 : i32
    %c1_i32_24 = arith.constant 1 : i32
    %50 = arith.minsi %49, %c1_i32_24 : i32
    %51 = arith.index_cast %50 : i32 to index
    %52 = memref.load %arg1[%51] : memref<2xi32, #tpu.memory_space<smem>>
    %c8_i32_25 = arith.constant 8 : i32
    %53 = arith.muli %50, %c8_i32_25 : i32
    %54 = arith.addi %53, %52 : i32
    %c4_i32_26 = arith.constant 4 : i32
    %c4_i32_27 = arith.constant 4 : i32
    %c0_i32_28 = arith.constant 0 : i32
    %55 = tpu.memref_slice %arg2[%54, %c0_i32_28] : memref<16x32xf32, #tpu.memory_space<any>> -> memref<1x32xf32, #tpu.memory_space<any>>
    %56 = tpu.memref_squeeze %55 : memref<1x32xf32, #tpu.memory_space<any>> -> memref<32xf32, #tpu.memory_space<any>>
    %c0_i32_29 = arith.constant 0 : i32
    %57 = tpu.memref_slice %arg5[%c4_i32_26, %c0_i32_29] : memref<8x32xf32, #tpu.memory_space<vmem>> -> memref<1x32xf32, #tpu.memory_space<vmem>>
    %58 = tpu.memref_squeeze %57 : memref<1x32xf32, #tpu.memory_space<vmem>> -> memref<32xf32, #tpu.memory_space<vmem>>
    %59 = tpu.memref_slice %arg6[%c4_i32_27] : memref<8x!tpu.dma_semaphore, #tpu.memory_space<semaphore_mem>> -> memref<1x!tpu.dma_semaphore, #tpu.memory_space<semaphore_mem>>
    %60 = tpu.memref_squeeze %59 : memref<1x!tpu.dma_semaphore, #tpu.memory_space<semaphore_mem>> -> memref<!tpu.dma_semaphore, #tpu.memory_space<semaphore_mem>>
    tpu.enqueue_dma source(%56 : memref<32xf32, #tpu.memory_space<any>>) target(%58 : memref<32xf32, #tpu.memory_space<vmem>>) target_semaphore(%60 : memref<!tpu.dma_semaphore, #tpu.memory_space<semaphore_mem>>)
    %c5_i32 = arith.constant 5 : i32
    %61 = arith.addi %0, %c5_i32 : i32
    %c1_i32_30 = arith.constant 1 : i32
    %62 = arith.minsi %61, %c1_i32_30 : i32
    %63 = arith.index_cast %62 : i32 to index
    %64 = memref.load %arg1[%63] : memref<2xi32, #tpu.memory_space<smem>>
    %c8_i32_31 = arith.constant 8 : i32
    %65 = arith.muli %62, %c8_i32_31 : i32
    %66 = arith.addi %65, %64 : i32
    %c5_i32_32 = arith.constant 5 : i32
    %c5_i32_33 = arith.constant 5 : i32
    %c0_i32_34 = arith.constant 0 : i32
    %67 = tpu.memref_slice %arg2[%66, %c0_i32_34] : memref<16x32xf32, #tpu.memory_space<any>> -> memref<1x32xf32, #tpu.memory_space<any>>
    %68 = tpu.memref_squeeze %67 : memref<1x32xf32, #tpu.memory_space<any>> -> memref<32xf32, #tpu.memory_space<any>>
    %c0_i32_35 = arith.constant 0 : i32
    %69 = tpu.memref_slice %arg5[%c5_i32_32, %c0_i32_35] : memref<8x32xf32, #tpu.memory_space<vmem>> -> memref<1x32xf32, #tpu.memory_space<vmem>>
    %70 = tpu.memref_squeeze %69 : memref<1x32xf32, #tpu.memory_space<vmem>> -> memref<32xf32, #tpu.memory_space<vmem>>
    %71 = tpu.memref_slice %arg6[%c5_i32_33] : memref<8x!tpu.dma_semaphore, #tpu.memory_space<semaphore_mem>> -> memref<1x!tpu.dma_semaphore, #tpu.memory_space<semaphore_mem>>
    %72 = tpu.memref_squeeze %71 : memref<1x!tpu.dma_semaphore, #tpu.memory_space<semaphore_mem>> -> memref<!tpu.dma_semaphore, #tpu.memory_space<semaphore_mem>>
    tpu.enqueue_dma source(%68 : memref<32xf32, #tpu.memory_space<any>>) target(%70 : memref<32xf32, #tpu.memory_space<vmem>>) target_semaphore(%72 : memref<!tpu.dma_semaphore, #tpu.memory_space<semaphore_mem>>)
    %c6_i32 = arith.constant 6 : i32
    %73 = arith.addi %0, %c6_i32 : i32
    %c1_i32_36 = arith.constant 1 : i32
    %74 = arith.minsi %73, %c1_i32_36 : i32
    %75 = arith.index_cast %74 : i32 to index
    %76 = memref.load %arg1[%75] : memref<2xi32, #tpu.memory_space<smem>>
    %c8_i32_37 = arith.constant 8 : i32
    %77 = arith.muli %74, %c8_i32_37 : i32
    %78 = arith.addi %77, %76 : i32
    %c6_i32_38 = arith.constant 6 : i32
    %c6_i32_39 = arith.constant 6 : i32
    %c0_i32_40 = arith.constant 0 : i32
    %79 = tpu.memref_slice %arg2[%78, %c0_i32_40] : memref<16x32xf32, #tpu.memory_space<any>> -> memref<1x32xf32, #tpu.memory_space<any>>
    %80 = tpu.memref_squeeze %79 : memref<1x32xf32, #tpu.memory_space<any>> -> memref<32xf32, #tpu.memory_space<any>>
    %c0_i32_41 = arith.constant 0 : i32
    %81 = tpu.memref_slice %arg5[%c6_i32_38, %c0_i32_41] : memref<8x32xf32, #tpu.memory_space<vmem>> -> memref<1x32xf32, #tpu.memory_space<vmem>>
    %82 = tpu.memref_squeeze %81 : memref<1x32xf32, #tpu.memory_space<vmem>> -> memref<32xf32, #tpu.memory_space<vmem>>
    %83 = tpu.memref_slice %arg6[%c6_i32_39] : memref<8x!tpu.dma_semaphore, #tpu.memory_space<semaphore_mem>> -> memref<1x!tpu.dma_semaphore, #tpu.memory_space<semaphore_mem>>
    %84 = tpu.memref_squeeze %83 : memref<1x!tpu.dma_semaphore, #tpu.memory_space<semaphore_mem>> -> memref<!tpu.dma_semaphore, #tpu.memory_space<semaphore_mem>>
    tpu.enqueue_dma source(%80 : memref<32xf32, #tpu.memory_space<any>>) target(%82 : memref<32xf32, #tpu.memory_space<vmem>>) target_semaphore(%84 : memref<!tpu.dma_semaphore, #tpu.memory_space<semaphore_mem>>)
    %c7_i32 = arith.constant 7 : i32
    %85 = arith.addi %0, %c7_i32 : i32
    %c1_i32_42 = arith.constant 1 : i32
    %86 = arith.minsi %85, %c1_i32_42 : i32
    %87 = arith.index_cast %86 : i32 to index
    %88 = memref.load %arg1[%87] : memref<2xi32, #tpu.memory_space<smem>>
    %c8_i32_43 = arith.constant 8 : i32
    %89 = arith.muli %86, %c8_i32_43 : i32
    %90 = arith.addi %89, %88 : i32
    %c7_i32_44 = arith.constant 7 : i32
    %c7_i32_45 = arith.constant 7 : i32
    %c0_i32_46 = arith.constant 0 : i32
    %91 = tpu.memref_slice %arg2[%90, %c0_i32_46] : memref<16x32xf32, #tpu.memory_space<any>> -> memref<1x32xf32, #tpu.memory_space<any>>
    %92 = tpu.memref_squeeze %91 : memref<1x32xf32, #tpu.memory_space<any>> -> memref<32xf32, #tpu.memory_space<any>>
    %c0_i32_47 = arith.constant 0 : i32
    %93 = tpu.memref_slice %arg5[%c7_i32_44, %c0_i32_47] : memref<8x32xf32, #tpu.memory_space<vmem>> -> memref<1x32xf32, #tpu.memory_space<vmem>>
    %94 = tpu.memref_squeeze %93 : memref<1x32xf32, #tpu.memory_space<vmem>> -> memref<32xf32, #tpu.memory_space<vmem>>
    %95 = tpu.memref_slice %arg6[%c7_i32_45] : memref<8x!tpu.dma_semaphore, #tpu.memory_space<semaphore_mem>> -> memref<1x!tpu.dma_semaphore, #tpu.memory_space<semaphore_mem>>
    %96 = tpu.memref_squeeze %95 : memref<1x!tpu.dma_semaphore, #tpu.memory_space<semaphore_mem>> -> memref<!tpu.dma_semaphore, #tpu.memory_space<semaphore_mem>>
    tpu.enqueue_dma source(%92 : memref<32xf32, #tpu.memory_space<any>>) target(%94 : memref<32xf32, #tpu.memory_space<vmem>>) target_semaphore(%96 : memref<!tpu.dma_semaphore, #tpu.memory_space<semaphore_mem>>)
    %c0_i32_48 = arith.constant 0 : i32
    %c0_i32_49 = arith.constant 0 : i32
    %c0_i32_50 = arith.constant 0 : i32
    %97 = tpu.memref_slice %arg2[%6, %c0_i32_50] : memref<16x32xf32, #tpu.memory_space<any>> -> memref<1x32xf32, #tpu.memory_space<any>>
    %98 = tpu.memref_squeeze %97 : memref<1x32xf32, #tpu.memory_space<any>> -> memref<32xf32, #tpu.memory_space<any>>
    %c0_i32_51 = arith.constant 0 : i32
    %99 = tpu.memref_slice %arg5[%c0_i32_48, %c0_i32_51] : memref<8x32xf32, #tpu.memory_space<vmem>> -> memref<1x32xf32, #tpu.memory_space<vmem>>
    %100 = tpu.memref_squeeze %99 : memref<1x32xf32, #tpu.memory_space<vmem>> -> memref<32xf32, #tpu.memory_space<vmem>>
    %101 = tpu.memref_slice %arg6[%c0_i32_49] : memref<8x!tpu.dma_semaphore, #tpu.memory_space<semaphore_mem>> -> memref<1x!tpu.dma_semaphore, #tpu.memory_space<semaphore_mem>>
    %102 = tpu.memref_squeeze %101 : memref<1x!tpu.dma_semaphore, #tpu.memory_space<semaphore_mem>> -> memref<!tpu.dma_semaphore, #tpu.memory_space<semaphore_mem>>
    tpu.wait_dma2 semaphore(%102 : memref<!tpu.dma_semaphore, #tpu.memory_space<semaphore_mem>>) src(%98 : memref<32xf32, #tpu.memory_space<any>>) dst(%100 : memref<32xf32, #tpu.memory_space<vmem>>)
    %c1_i32_52 = arith.constant 1 : i32
    %c1_i32_53 = arith.constant 1 : i32
    %c0_i32_54 = arith.constant 0 : i32
    %103 = tpu.memref_slice %arg2[%18, %c0_i32_54] : memref<16x32xf32, #tpu.memory_space<any>> -> memref<1x32xf32, #tpu.memory_space<any>>
    %104 = tpu.memref_squeeze %103 : memref<1x32xf32, #tpu.memory_space<any>> -> memref<32xf32, #tpu.memory_space<any>>
    %c0_i32_55 = arith.constant 0 : i32
    %105 = tpu.memref_slice %arg5[%c1_i32_52, %c0_i32_55] : memref<8x32xf32, #tpu.memory_space<vmem>> -> memref<1x32xf32, #tpu.memory_space<vmem>>
    %106 = tpu.memref_squeeze %105 : memref<1x32xf32, #tpu.memory_space<vmem>> -> memref<32xf32, #tpu.memory_space<vmem>>
    %107 = tpu.memref_slice %arg6[%c1_i32_53] : memref<8x!tpu.dma_semaphore, #tpu.memory_space<semaphore_mem>> -> memref<1x!tpu.dma_semaphore, #tpu.memory_space<semaphore_mem>>
    %108 = tpu.memref_squeeze %107 : memref<1x!tpu.dma_semaphore, #tpu.memory_space<semaphore_mem>> -> memref<!tpu.dma_semaphore, #tpu.memory_space<semaphore_mem>>
    tpu.wait_dma2 semaphore(%108 : memref<!tpu.dma_semaphore, #tpu.memory_space<semaphore_mem>>) src(%104 : memref<32xf32, #tpu.memory_space<any>>) dst(%106 : memref<32xf32, #tpu.memory_space<vmem>>)
    %c2_i32_56 = arith.constant 2 : i32
    %c2_i32_57 = arith.constant 2 : i32
    %c0_i32_58 = arith.constant 0 : i32
    %109 = tpu.memref_slice %arg2[%30, %c0_i32_58] : memref<16x32xf32, #tpu.memory_space<any>> -> memref<1x32xf32, #tpu.memory_space<any>>
    %110 = tpu.memref_squeeze %109 : memref<1x32xf32, #tpu.memory_space<any>> -> memref<32xf32, #tpu.memory_space<any>>
    %c0_i32_59 = arith.constant 0 : i32
    %111 = tpu.memref_slice %arg5[%c2_i32_56, %c0_i32_59] : memref<8x32xf32, #tpu.memory_space<vmem>> -> memref<1x32xf32, #tpu.memory_space<vmem>>
    %112 = tpu.memref_squeeze %111 : memref<1x32xf32, #tpu.memory_space<vmem>> -> memref<32xf32, #tpu.memory_space<vmem>>
    %113 = tpu.memref_slice %arg6[%c2_i32_57] : memref<8x!tpu.dma_semaphore, #tpu.memory_space<semaphore_mem>> -> memref<1x!tpu.dma_semaphore, #tpu.memory_space<semaphore_mem>>
    %114 = tpu.memref_squeeze %113 : memref<1x!tpu.dma_semaphore, #tpu.memory_space<semaphore_mem>> -> memref<!tpu.dma_semaphore, #tpu.memory_space<semaphore_mem>>
    tpu.wait_dma2 semaphore(%114 : memref<!tpu.dma_semaphore, #tpu.memory_space<semaphore_mem>>) src(%110 : memref<32xf32, #tpu.memory_space<any>>) dst(%112 : memref<32xf32, #tpu.memory_space<vmem>>)
    %c3_i32_60 = arith.constant 3 : i32
    %c3_i32_61 = arith.constant 3 : i32
    %c0_i32_62 = arith.constant 0 : i32
    %115 = tpu.memref_slice %arg2[%42, %c0_i32_62] : memref<16x32xf32, #tpu.memory_space<any>> -> memref<1x32xf32, #tpu.memory_space<any>>
    %116 = tpu.memref_squeeze %115 : memref<1x32xf32, #tpu.memory_space<any>> -> memref<32xf32, #tpu.memory_space<any>>
    %c0_i32_63 = arith.constant 0 : i32
    %117 = tpu.memref_slice %arg5[%c3_i32_60, %c0_i32_63] : memref<8x32xf32, #tpu.memory_space<vmem>> -> memref<1x32xf32, #tpu.memory_space<vmem>>
    %118 = tpu.memref_squeeze %117 : memref<1x32xf32, #tpu.memory_space<vmem>> -> memref<32xf32, #tpu.memory_space<vmem>>
    %119 = tpu.memref_slice %arg6[%c3_i32_61] : memref<8x!tpu.dma_semaphore, #tpu.memory_space<semaphore_mem>> -> memref<1x!tpu.dma_semaphore, #tpu.memory_space<semaphore_mem>>
    %120 = tpu.memref_squeeze %119 : memref<1x!tpu.dma_semaphore, #tpu.memory_space<semaphore_mem>> -> memref<!tpu.dma_semaphore, #tpu.memory_space<semaphore_mem>>
    tpu.wait_dma2 semaphore(%120 : memref<!tpu.dma_semaphore, #tpu.memory_space<semaphore_mem>>) src(%116 : memref<32xf32, #tpu.memory_space<any>>) dst(%118 : memref<32xf32, #tpu.memory_space<vmem>>)
    %c4_i32_64 = arith.constant 4 : i32
    %c4_i32_65 = arith.constant 4 : i32
    %c0_i32_66 = arith.constant 0 : i32
    %121 = tpu.memref_slice %arg2[%54, %c0_i32_66] : memref<16x32xf32, #tpu.memory_space<any>> -> memref<1x32xf32, #tpu.memory_space<any>>
    %122 = tpu.memref_squeeze %121 : memref<1x32xf32, #tpu.memory_space<any>> -> memref<32xf32, #tpu.memory_space<any>>
    %c0_i32_67 = arith.constant 0 : i32
    %123 = tpu.memref_slice %arg5[%c4_i32_64, %c0_i32_67] : memref<8x32xf32, #tpu.memory_space<vmem>> -> memref<1x32xf32, #tpu.memory_space<vmem>>
    %124 = tpu.memref_squeeze %123 : memref<1x32xf32, #tpu.memory_space<vmem>> -> memref<32xf32, #tpu.memory_space<vmem>>
    %125 = tpu.memref_slice %arg6[%c4_i32_65] : memref<8x!tpu.dma_semaphore, #tpu.memory_space<semaphore_mem>> -> memref<1x!tpu.dma_semaphore, #tpu.memory_space<semaphore_mem>>
    %126 = tpu.memref_squeeze %125 : memref<1x!tpu.dma_semaphore, #tpu.memory_space<semaphore_mem>> -> memref<!tpu.dma_semaphore, #tpu.memory_space<semaphore_mem>>
    tpu.wait_dma2 semaphore(%126 : memref<!tpu.dma_semaphore, #tpu.memory_space<semaphore_mem>>) src(%122 : memref<32xf32, #tpu.memory_space<any>>) dst(%124 : memref<32xf32, #tpu.memory_space<vmem>>)
    %c5_i32_68 = arith.constant 5 : i32
    %c5_i32_69 = arith.constant 5 : i32
    %c0_i32_70 = arith.constant 0 : i32
    %127 = tpu.memref_slice %arg2[%66, %c0_i32_70] : memref<16x32xf32, #tpu.memory_space<any>> -> memref<1x32xf32, #tpu.memory_space<any>>
    %128 = tpu.memref_squeeze %127 : memref<1x32xf32, #tpu.memory_space<any>> -> memref<32xf32, #tpu.memory_space<any>>
    %c0_i32_71 = arith.constant 0 : i32
    %129 = tpu.memref_slice %arg5[%c5_i32_68, %c0_i32_71] : memref<8x32xf32, #tpu.memory_space<vmem>> -> memref<1x32xf32, #tpu.memory_space<vmem>>
    %130 = tpu.memref_squeeze %129 : memref<1x32xf32, #tpu.memory_space<vmem>> -> memref<32xf32, #tpu.memory_space<vmem>>
    %131 = tpu.memref_slice %arg6[%c5_i32_69] : memref<8x!tpu.dma_semaphore, #tpu.memory_space<semaphore_mem>> -> memref<1x!tpu.dma_semaphore, #tpu.memory_space<semaphore_mem>>
    %132 = tpu.memref_squeeze %131 : memref<1x!tpu.dma_semaphore, #tpu.memory_space<semaphore_mem>> -> memref<!tpu.dma_semaphore, #tpu.memory_space<semaphore_mem>>
    tpu.wait_dma2 semaphore(%132 : memref<!tpu.dma_semaphore, #tpu.memory_space<semaphore_mem>>) src(%128 : memref<32xf32, #tpu.memory_space<any>>) dst(%130 : memref<32xf32, #tpu.memory_space<vmem>>)
    %c6_i32_72 = arith.constant 6 : i32
    %c6_i32_73 = arith.constant 6 : i32
    %c0_i32_74 = arith.constant 0 : i32
    %133 = tpu.memref_slice %arg2[%78, %c0_i32_74] : memref<16x32xf32, #tpu.memory_space<any>> -> memref<1x32xf32, #tpu.memory_space<any>>
    %134 = tpu.memref_squeeze %133 : memref<1x32xf32, #tpu.memory_space<any>> -> memref<32xf32, #tpu.memory_space<any>>
    %c0_i32_75 = arith.constant 0 : i32
    %135 = tpu.memref_slice %arg5[%c6_i32_72, %c0_i32_75] : memref<8x32xf32, #tpu.memory_space<vmem>> -> memref<1x32xf32, #tpu.memory_space<vmem>>
    %136 = tpu.memref_squeeze %135 : memref<1x32xf32, #tpu.memory_space<vmem>> -> memref<32xf32, #tpu.memory_space<vmem>>
    %137 = tpu.memref_slice %arg6[%c6_i32_73] : memref<8x!tpu.dma_semaphore, #tpu.memory_space<semaphore_mem>> -> memref<1x!tpu.dma_semaphore, #tpu.memory_space<semaphore_mem>>
    %138 = tpu.memref_squeeze %137 : memref<1x!tpu.dma_semaphore, #tpu.memory_space<semaphore_mem>> -> memref<!tpu.dma_semaphore, #tpu.memory_space<semaphore_mem>>
    tpu.wait_dma2 semaphore(%138 : memref<!tpu.dma_semaphore, #tpu.memory_space<semaphore_mem>>) src(%134 : memref<32xf32, #tpu.memory_space<any>>) dst(%136 : memref<32xf32, #tpu.memory_space<vmem>>)
    %c7_i32_76 = arith.constant 7 : i32
    %c7_i32_77 = arith.constant 7 : i32
    %c0_i32_78 = arith.constant 0 : i32
    %139 = tpu.memref_slice %arg2[%90, %c0_i32_78] : memref<16x32xf32, #tpu.memory_space<any>> -> memref<1x32xf32, #tpu.memory_space<any>>
    %140 = tpu.memref_squeeze %139 : memref<1x32xf32, #tpu.memory_space<any>> -> memref<32xf32, #tpu.memory_space<any>>
    %c0_i32_79 = arith.constant 0 : i32
    %141 = tpu.memref_slice %arg5[%c7_i32_76, %c0_i32_79] : memref<8x32xf32, #tpu.memory_space<vmem>> -> memref<1x32xf32, #tpu.memory_space<vmem>>
    %142 = tpu.memref_squeeze %141 : memref<1x32xf32, #tpu.memory_space<vmem>> -> memref<32xf32, #tpu.memory_space<vmem>>
    %143 = tpu.memref_slice %arg6[%c7_i32_77] : memref<8x!tpu.dma_semaphore, #tpu.memory_space<semaphore_mem>> -> memref<1x!tpu.dma_semaphore, #tpu.memory_space<semaphore_mem>>
    %144 = tpu.memref_squeeze %143 : memref<1x!tpu.dma_semaphore, #tpu.memory_space<semaphore_mem>> -> memref<!tpu.dma_semaphore, #tpu.memory_space<semaphore_mem>>
    tpu.wait_dma2 semaphore(%144 : memref<!tpu.dma_semaphore, #tpu.memory_space<semaphore_mem>>) src(%140 : memref<32xf32, #tpu.memory_space<any>>) dst(%142 : memref<32xf32, #tpu.memory_space<vmem>>)
    %c0 = arith.constant 0 : index
    %c0_80 = arith.constant 0 : index
    %145 = vector.load %arg5[%c0, %c0_80] : memref<8x32xf32, #tpu.memory_space<vmem>>, vector<8x32xf32>
    %c0_81 = arith.constant 0 : index
    %c0_82 = arith.constant 0 : index
    %146 = vector.load %arg3[%c0_81, %c0_82] : memref<32x128xf32, #tpu.memory_space<vmem>>, vector<32x128xf32>
    %cst = arith.constant dense<0.000000e+00> : vector<8x128xf32>
    %147 = tpu.matmul %145, %146, %cst {dimension_numbers = #tpu.dot_dimension_numbers<[1], [0], [0], [1], [0, 0, 1, 1], [], []>} : vector<8x32xf32>, vector<32x128xf32>, vector<8x128xf32> -> vector<8x128xf32>
    %148 = tpu.iota {dimensions = array<i32: 1>} : vector<8x128xi32>
    %c4_i32_83 = arith.constant 4 : i32
    %149 = vector.broadcast %c4_i32_83 : i32 to vector<8x128xi32>
    %150 = arith.cmpi slt, %148, %149 : vector<8x128xi32>
    %cst_84 = arith.constant 0xFF800000 : f32
    %151 = vector.broadcast %cst_84 : f32 to vector<8x128xf32>
    %152 = arith.select %150, %147, %151 : vector<8x128xi1>, vector<8x128xf32>
    %cst_85 = arith.constant dense<0xFF800000> : vector<8xf32>
    %153 = vector.multi_reduction <maximumf>, %152, %cst_85 [1] : vector<8x128xf32> to vector<8xf32>
    %154 = vector.shape_cast %153 : vector<8xf32> to vector<8x1xf32>
    %155 = vector.broadcast %154 : vector<8x1xf32> to vector<8x128xf32>
    %156 = arith.subf %152, %155 : vector<8x128xf32>
    %157 = math.exp %156 : vector<8x128xf32>
    %cst_86 = arith.constant dense<0.000000e+00> : vector<8xf32>
    %158 = vector.multi_reduction <add>, %157, %cst_86 [1] : vector<8x128xf32> to vector<8xf32>
    %159 = vector.shape_cast %158 : vector<8xf32> to vector<8x1xf32>
    %160 = vector.broadcast %159 : vector<8x1xf32> to vector<8x128xf32>
    %161 = arith.divf %157, %160 : vector<8x128xf32>
    %c0_87 = arith.constant 0 : index
    %c0_88 = arith.constant 0 : index
    %162 = vector.load %arg4[%c0_87, %c0_88] : memref<8x128xf32, #tpu.memory_space<vmem>>, vector<8x128xf32>
    tpu.vector_store %arg4[%c0_87, %c0_88], %161 {strides = array<i32>} : memref<8x128xf32, #tpu.memory_space<vmem>>, vector<8x128xf32>,
    return
  }
  func.func @transform_0(%arg0: i32) -> i32 {
    %c0_i32 = arith.constant 0 : i32
    %c0_i32_0 = arith.constant 0 : i32
    return %c0_i32 : i32
  }
  func.func @transform_2(%arg0: i32) -> (i32, i32) {
    %c0_i32 = arith.constant 0 : i32
    %c0_i32_0 = arith.constant 0 : i32
    %c0_i32_1 = arith.constant 0 : i32
    return %c0_i32, %c0_i32_0 : i32, i32
  }
  func.func @transform_3(%arg0: i32) -> (i32, i32) {
    %c0_i32 = arith.constant 0 : i32
    %c0_i32_0 = arith.constant 0 : i32
    return %arg0, %c0_i32 : i32, i32
  }
}

</mosaic_0001>

<bundles_post_ra>
// kernel: tpu_custom_call.1
= control target key start
LH: loop header
LB: loop body
LE: loop exit
PB: predicated region body
PF: predicated region fallthrough
CT: control target
= control target key end

     0   :  { %8 = vsyncpa [#allocation7], 0  ;;  %s870_s0 = inlined_call_operand.hbm [shape: s32[2], index: 0, kind: input, shape index: {}]   ;;  %s871_s1 = inlined_call_operand.hbm [shape: f32[16,32], index: 1, kind: input, shape index: {}]   ;;  %s872_s2 = inlined_call_operand.hbm [shape: f32[32,128], index: 2, kind: input, shape index: {}]   ;;  %s873_s3 = inlined_call_operand.hbm [shape: f32[8,128], index: 3, kind: output, shape index: {}]  }
   0x1   :  { %9 = vsyncpa [#allocation5], 0 }
   0x2   :  { %10 = vsyncpa [#allocation6], 0  ;;  %s735_s12 = smov [#allocation4]   ;;  %s736_s15 = smov [#allocation8]  }
   0x3   :  { %18 = dma.hbm_to_smem %s870_s0, 16, %s735_s12, [#allocation7]  }
   0x4   :  { %s24_s16 = sshll.u32 %s736_s15, 4  ;;  %s25_s16 = int_to_ptr.vmem [resolvable:$true] %s24_s16 }
   0x5   :  { %s505_s17 = scalar_lea.vmem %s25_s16, 512  ;;  %p510_p1 = scmp.lt.s32.totalorder %s25_s16, %s25_s16 }
   0x6   :  { %p506_p0 = scmp.ne.s32.totalorder %s25_s16, %s505_s17  ;;  %p511_p2 = scmp.lt.s32.totalorder %s505_s17, %s505_s17 }
   0x8   :  { %p512_p3 = por %p511_p2, %p510_p1 }
   0xa   :  { %p513_p4 = pnand %p512_p3, %p506_p0 }
   0xc   :  { %516 = shalt.err (!%p513_p4)
}
   0xd   :  { %s737_s18 = smov 128   ;;  %s738_s19 = smov 8  }
   0xe   :  { %30 = dma.hbm_to_vmem [thread:$0]  %s872_s2, 512, %s25_s16, [#allocation5], %s737_s18, %s737_s18, %s738_s19  }
   0xf   :  { %713 = dma.done.wait [#allocation7], 16  }
  0x10   :  { %714 = vsyncadd [#allocation7], 4294967280 }
  0x11   :  { %715 = dma.done.wait [#allocation5], 512  }
  0x12   :  { %716 = vsyncadd [#allocation5], 4294966784 }
  0x13   :  { %37 = sfence }
  0x14   :  { %s41_s0 = sld [smem:[#allocation4]]  ;;  %s739_s22 = smov [#allocation2]  }
  0x15   :  { %s53_s23 = sshll.u32 %s739_s22, 4  ;;  %s776_s24 = sld [smem:[#allocation4 + $0x1]]  ;;  %s778_s23 = int_to_ptr.vmem [resolvable:$true] %s53_s23 }
  0x16   :  { %s740_s25 = smov [#allocation2 + $0x1]   ;;  %s741_s27 = smov [#allocation2 + $0x2]  }
  0x17   :  { %s74_s26 = sshll.u32 %s740_s25, 4  ;;  %s95_s28 = sshll.u32 %s741_s27, 4  ;;  %s780_s26 = int_to_ptr.vmem [resolvable:$true] %s74_s26  ;;  %s782_s28 = int_to_ptr.vmem [resolvable:$true] %s95_s28 }
  0x18   :  { %s742_s29 = smov [#allocation2 + $0x3]   ;;  %s519_s11 = scalar_lea.hbm %s871_s1, 256 }
  0x19   :  { %s116_s30 = sshll.u32 %s742_s29, 4  ;;  %s803_s30 = int_to_ptr.vmem [resolvable:$true] %s116_s30 }
  0x1a   :  { %s416_s2 = sshll.u32 %s41_s0, 4 }
  0x1b   :  { %s45_s6 = scalar_lea.hbm %s871_s1, %s416_s2  ;;  %s440_s7 = sshll.u32 %s776_s24, 4 }
  0x1c   :  { %s517_s8 = scalar_lea.hbm %s45_s6, 16  ;;  %p520_p6 = scmp.lt.s32.totalorder %s45_s6, %s871_s1 }
  0x1d   :  { %p518_p5 = scmp.ne.s32.totalorder %s45_s6, %s517_s8  ;;  %p521_p7 = scmp.lt.s32.totalorder %s519_s11, %s517_s8 }
  0x1f   :  { %p522_p8 = por %p521_p7, %p520_p6 }
  0x21   :  { %p523_p9 = pnand %p522_p8, %p518_p5 }
  0x23   :  { %526 = shalt.err (!%p523_p9)  }
  0x24   :  { %s527_s14 = scalar_lea.vmem %s778_s23, 16  ;;  %s797_s15 = scalar_lea.vmem %s778_s23, 128 }
  0x25   :  { %p528_p10 = scmp.ne.s32.totalorder %s778_s23, %s527_s14  ;;  %p532_p11 = scmp.lt.s32.totalorder %s778_s23, %s778_s23 }
  0x26   :  { %p533_p12 = scmp.lt.s32.totalorder %s797_s15, %s527_s14 }
  0x28   :  { %p534_p13 = por %p533_p12, %p532_p11 }
  0x2a   :  { %p535_p0 = pnand %p534_p13, %p528_p10 }
  0x2c   :  { %538 = shalt.err (!%p535_p0)  }
  0x2d   :  { %56 = dma.hbm_to_vmem [thread:$0]  %s45_s6, 16, %s778_s23, [#allocation3] }
  0x2e   :  { %s441_s16 = sadd.s32 128, %s440_s7 }
  0x2f   :  { %s808_s19 = scalar_lea.hbm %s871_s1, %s441_s16 }
  0x30   :  { %s539_s20 = scalar_lea.hbm %s808_s19, 16  ;;  %p542_p2 = scmp.lt.s32.totalorder %s808_s19, %s871_s1 }
  0x31   :  { %p540_p1 = scmp.ne.s32.totalorder %s808_s19, %s539_s20  ;;  %p543_p3 = scmp.lt.s32.totalorder %s519_s11, %s539_s20 }
  0x33   :  { %p544_p4 = por %p543_p3, %p542_p2 }
  0x35   :  { %p816_p5 = pnand %p544_p4, %p540_p1 }
  0x37   :  { %548 = shalt.err (!%p816_p5)  }
  0x38   :  { %s549_s24 = scalar_lea.vmem %s780_s26, 16  ;;  %p554_p7 = scmp.lt.s32.totalorder %s780_s26, %s778_s23 }
  0x39   :  { %p550_p6 = scmp.ne.s32.totalorder %s780_s26, %s549_s24  ;;  %p555_p8 = scmp.lt.s32.totalorder %s797_s15, %s549_s24 }
  0x3b   :  { %p556_p9 = por %p555_p8, %p554_p7 }
  0x3d   :  { %p557_p10 = pnand %p556_p9, %p550_p6 }
  0x3f   :  { %560 = shalt.err (!%p557_p10)  }
  0x40   :  { %77 = dma.hbm_to_vmem [thread:$0]  %s808_s19, 16, %s780_s26, [#allocation3 + $0x1] }
  0x41   :  { %570 = shalt.err (!%p816_p5)  }
  0x42   :  { %s571_s1 = scalar_lea.vmem %s782_s28, 16  ;;  %p576_p12 = scmp.lt.s32.totalorder %s782_s28, %s778_s23 }
  0x43   :  { %p572_p11 = scmp.ne.s32.totalorder %s782_s28, %s571_s1  ;;  %p577_p13 = scmp.lt.s32.totalorder %s797_s15, %s571_s1 }
  0x45   :  { %p578_p0 = por %p577_p13, %p576_p12 }
  0x47   :  { %p579_p1 = pnand %p578_p0, %p572_p11 }
  0x49   :  { %582 = shalt.err (!%p579_p1)  }
  0x4a   :  { %98 = dma.hbm_to_vmem [thread:$0]  %s808_s19, 16, %s782_s28, [#allocation3 + $0x2] }
  0x4b   :  { %592 = shalt.err (!%p816_p5)  }
  0x4c   :  { %s593_s25 = scalar_lea.vmem %s803_s30, 16  ;;  %p598_p3 = scmp.lt.s32.totalorder %s803_s30, %s778_s23 }
  0x4d   :  { %p594_p2 = scmp.ne.s32.totalorder %s803_s30, %s593_s25  ;;  %p599_p4 = scmp.lt.s32.totalorder %s797_s15, %s593_s25 }
  0x4f   :  { %p600_p6 = por %p599_p4, %p598_p3 }
  0x51   :  { %p601_p7 = pnand %p600_p6, %p594_p2 }
  0x53   :  { %604 = shalt.err (!%p601_p7)  }
  0x54   :  { %119 = dma.hbm_to_vmem [thread:$0]  %s808_s19, 16, %s803_s30, [#allocation3 + $0x3] }
  0x55   :  { %s743_s26 = smov [#allocation2 + $0x4]   ;;  %s744_s28 = smov [#allocation2 + $0x5]  }
  0x56   :  { %s137_s27 = sshll.u32 %s743_s26, 4  ;;  %s158_s2 = sshll.u32 %s744_s28, 4  ;;  %s138_s27 = int_to_ptr.vmem [resolvable:$true] %s137_s27  ;;  %s159_s2 = int_to_ptr.vmem [resolvable:$true] %s158_s2 }
  0x57   :  { %614 = shalt.err (!%p816_p5)  }
  0x58   :  { %s615_s29 = scalar_lea.vmem %s138_s27, 16  ;;  %p620_p9 = scmp.lt.s32.totalorder %s138_s27, %s778_s23 }
  0x59   :  { %p616_p8 = scmp.ne.s32.totalorder %s138_s27, %s615_s29  ;;  %p621_p10 = scmp.lt.s32.totalorder %s797_s15, %s615_s29 }
  0x5b   :  { %p622_p11 = por %p621_p10, %p620_p9 }
  0x5d   :  { %p623_p12 = pnand %p622_p11, %p616_p8 }
  0x5f   :  { %626 = shalt.err (!%p623_p12)  }
  0x60   :  { %140 = dma.hbm_to_vmem [thread:$0]  %s808_s19, 16, %s138_s27, [#allocation3 + $0x4] }
  0x61   :  { %636 = shalt.err (!%p816_p5)  }
  0x62   :  { %s637_s30 = scalar_lea.vmem %s159_s2, 16  ;;  %p642_p0 = scmp.lt.s32.totalorder %s159_s2, %s778_s23 }
  0x63   :  { %p638_p13 = scmp.ne.s32.totalorder %s159_s2, %s637_s30  ;;  %p643_p1 = scmp.lt.s32.totalorder %s797_s15, %s637_s30 }
  0x65   :  { %p644_p2 = por %p643_p1, %p642_p0 }
  0x67   :  { %p645_p3 = pnand %p644_p2, %p638_p13 }
  0x69   :  { %648 = shalt.err (!%p645_p3)  }
  0x6a   :  { %161 = dma.hbm_to_vmem [thread:$0]  %s808_s19, 16, %s159_s2, [#allocation3 + $0x5] }
  0x6b   :  { %s745_s4 = smov [#allocation2 + $0x6]   ;;  %s746_s6 = smov [#allocation2 + $0x7]  }
  0x6c   :  { %s179_s5 = sshll.u32 %s745_s4, 4  ;;  %s200_s7 = sshll.u32 %s746_s6, 4  ;;  %s180_s5 = int_to_ptr.vmem [resolvable:$true] %s179_s5  ;;  %s201_s7 = int_to_ptr.vmem [resolvable:$true] %s200_s7 }
  0x6d   :  { %658 = shalt.err (!%p816_p5)  }
  0x6e   :  { %s659_s8 = scalar_lea.vmem %s180_s5, 16  ;;  %p664_p6 = scmp.lt.s32.totalorder %s180_s5, %s778_s23 }
  0x6f   :  { %p660_p4 = scmp.ne.s32.totalorder %s180_s5, %s659_s8  ;;  %p665_p7 = scmp.lt.s32.totalorder %s797_s15, %s659_s8 }
  0x71   :  { %p666_p8 = por %p665_p7, %p664_p6 }
  0x73   :  { %p667_p9 = pnand %p666_p8, %p660_p4 }
  0x75   :  { %670 = shalt.err (!%p667_p9)  }
  0x76   :  { %182 = dma.hbm_to_vmem [thread:$0]  %s808_s19, 16, %s180_s5, [#allocation3 + $0x6] }
  0x77   :  { %680 = shalt.err (!%p816_p5)  }
  0x78   :  { %s681_s9 = scalar_lea.vmem %s201_s7, 16  ;;  %p686_p11 = scmp.lt.s32.totalorder %s201_s7, %s778_s23 }
  0x79   :  { %p682_p10 = scmp.ne.s32.totalorder %s201_s7, %s681_s9  ;;  %p687_p12 = scmp.lt.s32.totalorder %s797_s15, %s681_s9 }
  0x7b   :  { %p688_p13 = por %p687_p12, %p686_p11 }
  0x7d   :  { %p689_p0 = pnand %p688_p13, %p682_p10 }
  0x7f   :  { %692 = shalt.err (!%p689_p0)  }
  0x80   :  { %203 = dma.hbm_to_vmem [thread:$0]  %s808_s19, 16, %s201_s7, [#allocation3 + $0x7] }
  0x81   :  { %717 = dma.done.wait [#allocation3], 16 }
  0x82   :  { %718 = vsyncadd [#allocation3], 4294967280 }
  0x83   :  { %719 = dma.done.wait [#allocation3 + $0x1], 16 }
  0x84   :  { %720 = vsyncadd [#allocation3 + $0x1], 4294967280 }
  0x85   :  { %721 = dma.done.wait [#allocation3 + $0x2], 16 }
  0x86   :  { %722 = vsyncadd [#allocation3 + $0x2], 4294967280 }
  0x87   :  { %723 = dma.done.wait [#allocation3 + $0x3], 16 }
  0x88   :  { %724 = vsyncadd [#allocation3 + $0x3], 4294967280 }
  0x89   :  { %725 = dma.done.wait [#allocation3 + $0x4], 16 }
  0x8a   :  { %726 = vsyncadd [#allocation3 + $0x4], 4294967280 }
  0x8b   :  { %727 = dma.done.wait [#allocation3 + $0x5], 16 }
  0x8c   :  { %728 = vsyncadd [#allocation3 + $0x5], 4294967280 }
  0x8d   :  { %729 = dma.done.wait [#allocation3 + $0x6], 16 }
  0x8e   :  { %730 = vsyncadd [#allocation3 + $0x6], 4294967280 }
  0x8f   :  { %731 = dma.done.wait [#allocation3 + $0x7], 16 }
  0x90   :  { %732 = vsyncadd [#allocation3 + $0x7], 4294967280  ;;  %v747_v0 = vmov 0.0   ;;  %vm748_vm0 = vmmov 0   ;;  %v224_v1 = vld [vmem:[#allocation8 + $0x18] sm:$0xff]  ;;  %v223_v2 = vld [vmem:[#allocation8 + $0x10] sm:$0xff]  ;;  %v299_v6 = vlaneseq }
  0x91   :  { %459 = vmatprep.subr.mxu0 %v747_v0  ;;  %467 = vmatprep.mubr.msk.f32.mxu0 %vm748_vm0, %v747_v0  ;;  %v222_v3 = vld [vmem:[#allocation8 + $0x8] sm:$0xff]  ;;  %v221_v4 = vld [vmem:[#allocation8] sm:$0xff]  ;;  %v220_v5 = vld [vmem:[#allocation2] sm:$0xff]  ;;  %vm225_vm1 = vcmask 261120   ;;  %s749_s23 = smov [#allocation9]  }
  0x92   :  { %460 = vmatpush3.msra.mxu0 %v224_v1  ;;  %v300_v7 = vand.u32 127, %v299_v6  ;;  %s319_s10 = sshll.u32 %s749_s23, 4  ;;  %s320_s10 = int_to_ptr.vmem [resolvable:$true] %s319_s10 }
  0x93   :  { %461 = vmatprep.subr.mxu0 %v747_v0  ;;  %s693_s11 = scalar_lea.vmem %s320_s10, 128  ;;  %p698_p1 = scmp.lt.s32.totalorder %s320_s10, %s320_s10 }
  0x94   :  { %462 = vmatpush3.msra.mxu0 %v223_v2  ;;  %vm301_vm2 = vcmp.lt.s32.totalorder %v300_v7, 4  ;;  %p694_p5 = scmp.ne.s32.totalorder %s320_s10, %s693_s11  ;;  %p699_p2 = scmp.lt.s32.totalorder %s693_s11, %s693_s11 }
  0x95   :  { %463 = vmatprep.subr.mxu0 %v747_v0 }
  0x96   :  { %464 = vmatpush3.msra.mxu0 %v222_v3  ;;  %p700_p3 = por %p699_p2, %p698_p1 }
  0x97   :  { %465 = vmatprep.subr.mxu0 %v747_v0 }
  0x98   :  { %466 = vmatpush3.msra.mxu0 %v221_v4  ;;  %p701_p4 = pnand %p700_p3, %p694_p5 }
  0x99   :  { %468 = vmatmul.mubr.msk.f32.vlgmr.msra.gmra.mxu0 %vm225_vm1, %v220_v5 }
 0x159   :  { %v295_v8 = vpop.f32.mrf.mxu0 }
 0x15a   :  { %v302_v9 = vsel %vm301_vm2, %v295_v8, -inf }
 0x15b   :  { %303 = vmax.xlane.f32.xlu0 %v302_v9  ;;  %v469_v10 = vpop.f32.mrf.mxu0 }
 0x1e4   :  { %v304_v11 = vpop.xlane.xlu0 %303 }
 0x1e5   :  { %v305_v12 = vsub.f32 %v302_v9, %v304_v11 }
 0x1e7   :  { %v306_v13 = vmul.f32 1.442695, %v305_v12 }
 0x1e9   :  { %485 = vpow2.f32 %v306_v13 }
 0x1f6   :  { %v486_v14 = vpop.eup %485 }
 0x1f7   :  { %308 = vadd.xlane.f32.xlu0 %v486_v14 }
 0x280   :  { %v309_v15 = vpop.xlane.xlu0 %308 }
 0x281   :  { %487 = vrcp.f32 %v309_v15 }
 0x28e   :  { %v488_v16 = vpop.eup %487 }
 0x28f   :  { %v311_v17 = vmul.f32 %v488_v16, %v486_v14 }
 0x291   :  { %312 = vst [vmem:[#allocation9] sm:$0xff] %v311_v17 }
 0x292   :  { %704 = shalt.err (!%p701_p4)
}
 0x293   :  { %322 = dma.vmem_to_hbm [thread:$0]  %s320_s10, 128, %s873_s3, [#allocation6]  }
 0x294   :  { %733 = dma.done.wait [#allocation6], 128  }
 0x295   :  { %734 = vsyncadd [#allocation6], 4294967168 }
 0x296   :  { %326 = vsyncpa [#allocation5], 1 }
 0x297   :  { %327 = vsyncpa [#allocation6], 1 }
 0x298   :  { %328 = vsyncpa [#allocation7], 1 }
 0x299   :  { %329 = vsyncmov [#allocation3] }
 0x29c   :  { %s330_s14 = vpop.sfrf %329 }
 0x29d   :  { %p432_p6 = scmp.ne.s32.totalorder %s330_s14, 0 }
 0x29f   :  { %334 = shalt.err (%p432_p6)  }
 0x2a0   :  { %336 = vsyncmov [#allocation3 + $0x1] }
 0x2a3   :  { %s337_s15 = vpop.sfrf %336 }
 0x2a4   :  { %p433_p7 = scmp.ne.s32.totalorder %s337_s15, 0 }
 0x2a6   :  { %341 = shalt.err (%p433_p7)  }
 0x2a7   :  { %343 = vsyncmov [#allocation3 + $0x2] }
 0x2aa   :  { %s344_s16 = vpop.sfrf %343 }
 0x2ab   :  { %p434_p8 = scmp.ne.s32.totalorder %s344_s16, 0 }
 0x2ad   :  { %348 = shalt.err (%p434_p8)  }
 0x2ae   :  { %350 = vsyncmov [#allocation3 + $0x3] }
 0x2b1   :  { %s351_s17 = vpop.sfrf %350 }
 0x2b2   :  { %p435_p9 = scmp.ne.s32.totalorder %s351_s17, 0 }
 0x2b4   :  { %355 = shalt.err (%p435_p9)  }
 0x2b5   :  { %357 = vsyncmov [#allocation3 + $0x4] }
 0x2b8   :  { %s358_s3 = vpop.sfrf %357 }
 0x2b9   :  { %p436_p10 = scmp.ne.s32.totalorder %s358_s3, 0 }
 0x2bb   :  { %362 = shalt.err (%p436_p10)  }
 0x2bc   :  { %364 = vsyncmov [#allocation3 + $0x5] }
 0x2bf   :  { %s365_s18 = vpop.sfrf %364 }
 0x2c0   :  { %p437_p11 = scmp.ne.s32.totalorder %s365_s18, 0 }
 0x2c2   :  { %369 = shalt.err (%p437_p11)  }
 0x2c3   :  { %371 = vsyncmov [#allocation3 + $0x6] }
 0x2c6   :  { %s372_s19 = vpop.sfrf %371 }
 0x2c7   :  { %p438_p12 = scmp.ne.s32.totalorder %s372_s19, 0 }
 0x2c9   :  { %376 = shalt.err (%p438_p12)  }
 0x2ca   :  { %378 = vsyncmov [#allocation3 + $0x7] }
 0x2cd   :  { %s379_s20 = vpop.sfrf %378 }
 0x2ce   :  { %p439_p13 = scmp.ne.s32.totalorder %s379_s20, 0 }
 0x2d0   :  { %383 = shalt.err (%p439_p13)  }

</bundles_post_ra>
